<compile_context>
chip_gen: v7x
topology: tpu7x:2x2x1
jax: 0.10.0
libtpu: 0.0.40
codegen_flags: <defaults>
</compile_context>

<pallas_src>
import functools

import jax
import jax.numpy as jnp
from jax.experimental import pallas as pl
from jax.experimental.pallas import tpu as pltpu


# ----------------------------------------------------------------------------
# Kernel: one (TS, W) seq-tile per grid step, W = n_heads * head_dim.
# ----------------------------------------------------------------------------
def _rope_kernel(cos_ref, sin_ref, q_ref, k_ref, qo_ref, ko_ref, *,
                 half, rope_dim, head_dim, width):
    c = cos_ref[...]    # (TS, W): cos on rope lanes, 1 (unused) on pass lanes
    s = sin_ref[...]    # (TS, W): -sin on first rope half, +sin on second, 0 on pass

    lane = jax.lax.broadcasted_iota(jnp.int32, c.shape, dimension=1)
    lane_in_head = lane % head_dim
    first_half = lane_in_head < half        # rotate-half partner is x[j + half]
    is_rope = lane_in_head < rope_dim       # pass-through lanes copied verbatim

    def apply(x):  # x: (TS, W), lane-dense
        # roll(x, W-half)[j] = x[j + half]   (partner for first rope half)
        # roll(x, half)  [j] = x[j - half]   (partner for second rope half)
        partner = jnp.where(
            first_half,
            pltpu.roll(x, shift=width - half, axis=1),
            pltpu.roll(x, shift=half, axis=1),
        )
        rotated = x * c + partner * s
        return jnp.where(is_rope, rotated, x)

    qo_ref[...] = apply(q_ref[...]).astype(qo_ref.dtype)
    ko_ref[...] = apply(k_ref[...]).astype(ko_ref.dtype)


# ----------------------------------------------------------------------------
# Generation-aware tiling / VMEM budgeting.
# ----------------------------------------------------------------------------
def _vmem_capacity_bytes():
    try:
        info = pltpu.get_tpu_info()
        cap = getattr(info, "vmem_capacity_bytes", None)
        if cap:
            return int(cap)
    except Exception:
        pass
    return 64 << 20  # conservative default (v7x-sized)


def _round_up(n, m):
    return ((n + m - 1) // m) * m


def _pick_seq_tile(seq_len, width, itemsize, vmem_cap):
    # Per-block budget: ~4 MiB on 128-MiB-VMEM parts (v5e/v6e), ~2 MiB on
    # 64-MiB parts (v7x), so (2 tables + 2 in + 2 out) x 2 buffers + roll
    # temporaries stays well inside VMEM while amortizing the ~0.35 us
    # fixed per-step pipeline overhead.
    budget = (4 << 20) if vmem_cap >= (100 << 20) else (2 << 20)
    max_rows = max(8, budget // max(1, width * itemsize))
    ts = 8
    for cand in (2048, 1024, 512, 256, 128, 64, 32, 16, 8):
        if cand <= max_rows:
            ts = cand
            break
    # Never allocate a block taller than the (8-row padded) sequence.
    ts = min(ts, max(8, _round_up(seq_len, 8)))
    return ts


# ----------------------------------------------------------------------------
# cos/sin table cache (mirrors the PyTorch module's _cache, hoisted per-shape).
# ----------------------------------------------------------------------------
_TABLE_CACHE = {}


def _get_tables(seq_len, n_heads, head_dim, rope_dim, base, dtype):
    key = (seq_len, n_heads, head_dim, rope_dim, base, jnp.dtype(dtype).name)
    cached = _TABLE_CACHE.get(key)
    if cached is not None:
        return cached

    half = rope_dim // 2
    theta = 1.0 / jnp.power(
        jnp.float32(base), jnp.arange(0, rope_dim, 2, dtype=jnp.float32) / rope_dim
    )                                                   # (rope_dim/2,)
    t = jnp.arange(seq_len, dtype=jnp.float32)          # (S,)
    freqs = jnp.outer(t, theta)                         # (S, rope_dim/2)
    embs = jnp.concatenate([freqs, freqs], axis=-1)     # (S, rope_dim)
    cos = jnp.cos(embs)
    sin = jnp.sin(embs)

    ones_pad = jnp.ones((seq_len, head_dim - rope_dim), jnp.float32)
    zero_pad = jnp.zeros((seq_len, head_dim - rope_dim), jnp.float32)

    cos_full = jnp.concatenate([cos, ones_pad], axis=-1)                     # (S, D)
    sin_signed = jnp.concatenate([-sin[:, :half], sin[:, half:], zero_pad],
                                 axis=-1)                                    # (S, D)

    # Tile across heads -> lane-dense (S, H*D); cast once to compute dtype
    # (matches PyTorch's cos.to(dtype=q.dtype)).
    cos_full = jnp.tile(cos_full, (1, n_heads)).astype(dtype)
    sin_signed = jnp.tile(sin_signed, (1, n_heads)).astype(dtype)

    _TABLE_CACHE[key] = (cos_full, sin_signed)
    return cos_full, sin_signed


# ----------------------------------------------------------------------------
# Wrapper.
# ----------------------------------------------------------------------------
def rotary_positional_embedding(q, k, v, *, dim=32, base=10000):
    B, S, H, D = q.shape
    assert dim % 2 == 0 and dim <= D, "rope dim must be even and <= head_dim"
    half = dim // 2
    W = H * D
    dtype = q.dtype
    itemsize = jnp.dtype(dtype).itemsize

    cos_full, sin_full = _get_tables(S, H, D, dim, base, dtype)

    q2 = q.reshape(B, S, W)
    k2 = k.reshape(B, S, W)

    vmem_cap = _vmem_capacity_bytes()
    TS = _pick_seq_tile(S, W, itemsize, vmem_cap)
    num_s_tiles = pl.cdiv(S, TS)

    # Resident footprint: 6 streams (cos, sin, q, k, qo, ko) x double buffer.
    block_bytes = TS * W * itemsize
    resident = 6 * 2 * block_bytes
    vmem_limit = min(int(vmem_cap * 0.7), resident + (16 << 20))

    # Grid: (seq-tile, batch) with batch INNERMOST so the table blocks (whose
    # index only depends on the seq-tile) stay resident across all B steps.
    grid = (num_s_tiles, B)
    tab_spec = pl.BlockSpec((TS, W), lambda s, b: (s, 0))
    qk_spec = pl.BlockSpec((None, TS, W), lambda s, b: (b, s, 0))  # batch squeezed

    kernel = functools.partial(
        _rope_kernel, half=half, rope_dim=dim, head_dim=D, width=W
    )

    q_rot, k_rot = pl.pallas_call(
        kernel,
        out_shape=(
            jax.ShapeDtypeStruct((B, S, W), q.dtype),
            jax.ShapeDtypeStruct((B, S, W), k.dtype),
        ),
        grid_spec=pltpu.PrefetchScalarGridSpec(
            num_scalar_prefetch=0,
            grid=grid,
            in_specs=[tab_spec, tab_spec, qk_spec, qk_spec],
            out_specs=[qk_spec, qk_spec],
        ),
        compiler_params=pltpu.CompilerParams(
            dimension_semantics=("parallel", "arbitrary"),
            vmem_limit_bytes=vmem_limit,
        ),
    )(cos_full, sin_full, q2, k2)

    # v is returned unchanged by the module.
    return q_rot.reshape(B, S, H, D), k_rot.reshape(B, S, H, D), v


# ----------------------------------------------------------------------------
# Pure-JAX reference (mirrors the PyTorch forward exactly) for verification.
# ----------------------------------------------------------------------------
def _reference(q, k, v, *, dim=32, base=10000):
    B, S, H, D = q.shape
    theta = 1.0 / jnp.power(
        jnp.float32(base), jnp.arange(0, dim, 2, dtype=jnp.float32) / dim
    )
    t = jnp.arange(S, dtype=jnp.float32)
    freqs = jnp.outer(t, theta)
    embs = jnp.concatenate([freqs, freqs], axis=-1)
    cos = jnp.cos(embs).astype(q.dtype)
    sin = jnp.sin(embs).astype(q.dtype)

    def apply(x):  # (B, S, H, D)
        xt = jnp.transpose(x, (0, 2, 1, 3))  # (B, H, S, D)
        x_rope, x_pass = xt[..., :dim], xt[..., dim:]
        neg = jnp.concatenate(
            [-x_rope[..., dim // 2:], x_rope[..., : dim // 2]], axis=-1
        )
        rot = x_rope * cos[:S] + neg * sin[:S]
        out = jnp.concatenate([rot, x_pass], axis=-1)
        return jnp.transpose(out, (0, 2, 1, 3))

    return apply(q), apply(k), v


if __name__ == "__main__":
    B, S, H, D = 2, 16, 4, 64  # head_dim=64, rope dim=32 (rest passes through)
    key = jax.random.PRNGKey(0)
    kq, kk, kv = jax.random.split(key, 3)
    q = jax.random.normal(kq, (B, S, H, D), dtype=jnp.float32)
    k = jax.random.normal(kk, (B, S, H, D), dtype=jnp.float32)
    v = jax.random.normal(kv, (B, S, H, D), dtype=jnp.float32)

    q_rot, k_rot, v_out = rotary_positional_embedding(q, k, v, dim=32, base=10000)
    jax.block_until_ready((q_rot, k_rot, v_out))

    q_ref, k_ref, v_ref = _reference(q, k, v, dim=32, base=10000)
    assert jnp.allclose(q_rot, q_ref, atol=1e-5, rtol=1e-5)
    assert jnp.allclose(k_rot, k_ref, atol=1e-5, rtol=1e-5)
    assert jnp.allclose(v_out, v_ref)

    print("KERNEL_OK")
</pallas_src>

<mosaic_0001>
module attributes {stable_mosaic.version = 11 : i64} {
  func.func @_rope_kernel(%arg0: i32, %arg1: i32, %arg2: memref<16x256xf32, #tpu.memory_space<vmem>>, %arg3: memref<16x256xf32, #tpu.memory_space<vmem>>, %arg4: memref<1x16x256xf32, #tpu.memory_space<vmem>>, %arg5: memref<1x16x256xf32, #tpu.memory_space<vmem>>, %arg6: memref<1x16x256xf32, #tpu.memory_space<vmem>>, %arg7: memref<1x16x256xf32, #tpu.memory_space<vmem>>) attributes {dimension_semantics = [#tpu.dimension_semantics<parallel>, #tpu.dimension_semantics<arbitrary>], iteration_bounds = array<i64: 1, 2>, scalar_prefetch = 0 : i64, scratch_operands = 0 : i64, tpu.core_type = #tpu.core_type<tc>, window_params = [{transform_indices = @transform_0, window_bounds = array<i64: 16, 256>}, {transform_indices = @transform_1, window_bounds = array<i64: 16, 256>}, {transform_indices = @transform_2, window_bounds = array<i64: 1, 16, 256>}, {transform_indices = @transform_3, window_bounds = array<i64: 1, 16, 256>}, {transform_indices = @transform_4, window_bounds = array<i64: 1, 16, 256>}, {transform_indices = @transform_5, window_bounds = array<i64: 1, 16, 256>}]} {
    %c0 = arith.constant 0 : index
    %c0_0 = arith.constant 0 : index
    %0 = vector.load %arg2[%c0, %c0_0] : memref<16x256xf32, #tpu.memory_space<vmem>>, vector<16x256xf32>
    %c0_1 = arith.constant 0 : index
    %c0_2 = arith.constant 0 : index
    %1 = vector.load %arg3[%c0_1, %c0_2] : memref<16x256xf32, #tpu.memory_space<vmem>>, vector<16x256xf32>
    %2 = tpu.iota {dimensions = array<i32: 1>} : vector<16x256xi32>
    %c64_i32 = arith.constant 64 : i32
    %c0_i32 = arith.constant 0 : i32
    %3 = arith.cmpi eq, %c64_i32, %c0_i32 : i32
    %c1_i32 = arith.constant 1 : i32
    %4 = arith.select %3, %c1_i32, %c64_i32 : i32
    %5 = vector.broadcast %4 : i32 to vector<16x256xi32>
    %6 = arith.remsi %2, %5 : vector<16x256xi32>
    %c0_i32_3 = arith.constant 0 : i32
    %7 = vector.broadcast %c0_i32_3 : i32 to vector<16x256xi32>
    %8 = arith.cmpi ne, %6, %7 : vector<16x256xi32>
    %c0_i32_4 = arith.constant 0 : i32
    %9 = vector.broadcast %c0_i32_4 : i32 to vector<16x256xi32>
    %10 = arith.cmpi slt, %6, %9 : vector<16x256xi32>
    %c0_i32_5 = arith.constant 0 : i32
    %11 = arith.cmpi slt, %4, %c0_i32_5 : i32
    %12 = vector.broadcast %11 : i1 to vector<16x256xi1>
    %13 = vector.broadcast %12 : vector<16x256xi1> to vector<16x256xi1>
    %14 = arith.xori %10, %13 : vector<16x256xi1>
    %15 = arith.andi %14, %8 : vector<16x256xi1>
    %16 = vector.broadcast %4 : i32 to vector<16x256xi32>
    %17 = arith.addi %6, %16 : vector<16x256xi32>
    %18 = arith.select %15, %17, %6 : vector<16x256xi1>, vector<16x256xi32>
    %c16_i32 = arith.constant 16 : i32
    %19 = vector.broadcast %c16_i32 : i32 to vector<16x256xi32>
    %20 = arith.cmpi slt, %18, %19 : vector<16x256xi32>
    %c32_i32 = arith.constant 32 : i32
    %21 = vector.broadcast %c32_i32 : i32 to vector<16x256xi32>
    %22 = arith.cmpi slt, %18, %21 : vector<16x256xi32>
    %c0_6 = arith.constant 0 : index
    %c0_7 = arith.constant 0 : index
    %c0_8 = arith.constant 0 : index
    %23 = vector.load %arg4[%c0_6, %c0_7, %c0_8] : memref<1x16x256xf32, #tpu.memory_space<vmem>>, vector<1x16x256xf32>
    %24 = vector.shape_cast %23 : vector<1x16x256xf32> to vector<16x256xf32>
    %c240_i32 = arith.constant 240 : i32
    %25 = tpu.dynamic_rotate %24 by %c240_i32 dim 1 : vector<16x256xf32>, i32 -> vector<16x256xf32>
    %c16_i32_9 = arith.constant 16 : i32
    %26 = tpu.dynamic_rotate %24 by %c16_i32_9 dim 1 : vector<16x256xf32>, i32 -> vector<16x256xf32>
    %27 = arith.select %20, %25, %26 : vector<16x256xi1>, vector<16x256xf32>
    %28 = arith.mulf %24, %0 : vector<16x256xf32>
    %29 = arith.mulf %27, %1 : vector<16x256xf32>
    %30 = arith.addf %28, %29 : vector<16x256xf32>
    %31 = arith.select %22, %30, %24 : vector<16x256xi1>, vector<16x256xf32>
    %c0_10 = arith.constant 0 : index
    %c0_11 = arith.constant 0 : index
    %c0_12 = arith.constant 0 : index
    %32 = vector.load %arg6[%c0_10, %c0_11, %c0_12] : memref<1x16x256xf32, #tpu.memory_space<vmem>>, vector<1x16x256xf32>
    %33 = vector.shape_cast %32 : vector<1x16x256xf32> to vector<16x256xf32>
    %34 = vector.shape_cast %31 : vector<16x256xf32> to vector<1x16x256xf32>
    tpu.vector_store %arg6[%c0_10, %c0_11, %c0_12], %34 {strides = array<i32>} : memref<1x16x256xf32, #tpu.memory_space<vmem>>, vector<1x16x256xf32>,
    %c0_13 = arith.constant 0 : index
    %c0_14 = arith.constant 0 : index
    %c0_15 = arith.constant 0 : index
    %35 = vector.load %arg5[%c0_13, %c0_14, %c0_15] : memref<1x16x256xf32, #tpu.memory_space<vmem>>, vector<1x16x256xf32>
    %36 = vector.shape_cast %35 : vector<1x16x256xf32> to vector<16x256xf32>
    %c240_i32_16 = arith.constant 240 : i32
    %37 = tpu.dynamic_rotate %36 by %c240_i32_16 dim 1 : vector<16x256xf32>, i32 -> vector<16x256xf32>
    %c16_i32_17 = arith.constant 16 : i32
    %38 = tpu.dynamic_rotate %36 by %c16_i32_17 dim 1 : vector<16x256xf32>, i32 -> vector<16x256xf32>
    %39 = arith.select %20, %37, %38 : vector<16x256xi1>, vector<16x256xf32>
    %40 = arith.mulf %36, %0 : vector<16x256xf32>
    %41 = arith.mulf %39, %1 : vector<16x256xf32>
    %42 = arith.addf %40, %41 : vector<16x256xf32>
    %43 = arith.select %22, %42, %36 : vector<16x256xi1>, vector<16x256xf32>
    %c0_18 = arith.constant 0 : index
    %c0_19 = arith.constant 0 : index
    %c0_20 = arith.constant 0 : index
    %44 = vector.load %arg7[%c0_18, %c0_19, %c0_20] : memref<1x16x256xf32, #tpu.memory_space<vmem>>, vector<1x16x256xf32>
    %45 = vector.shape_cast %44 : vector<1x16x256xf32> to vector<16x256xf32>
    %46 = vector.shape_cast %43 : vector<16x256xf32> to vector<1x16x256xf32>
    tpu.vector_store %arg7[%c0_18, %c0_19, %c0_20], %46 {strides = array<i32>} : memref<1x16x256xf32, #tpu.memory_space<vmem>>, vector<1x16x256xf32>,
    return
  }
  func.func @transform_0(%arg0: i32, %arg1: i32) -> (i32, i32) {
    %c0_i32 = arith.constant 0 : i32
    %c0_i32_0 = arith.constant 0 : i32
    return %arg0, %c0_i32 : i32, i32
  }
  func.func @transform_1(%arg0: i32, %arg1: i32) -> (i32, i32) {
    %c0_i32 = arith.constant 0 : i32
    %c0_i32_0 = arith.constant 0 : i32
    return %arg0, %c0_i32 : i32, i32
  }
  func.func @transform_2(%arg0: i32, %arg1: i32) -> (i32, i32, i32) {
    %c0_i32 = arith.constant 0 : i32
    %c0_i32_0 = arith.constant 0 : i32
    return %arg1, %arg0, %c0_i32 : i32, i32, i32
  }
  func.func @transform_3(%arg0: i32, %arg1: i32) -> (i32, i32, i32) {
    %c0_i32 = arith.constant 0 : i32
    %c0_i32_0 = arith.constant 0 : i32
    return %arg1, %arg0, %c0_i32 : i32, i32, i32
  }
  func.func @transform_4(%arg0: i32, %arg1: i32) -> (i32, i32, i32) {
    %c0_i32 = arith.constant 0 : i32
    %c0_i32_0 = arith.constant 0 : i32
    return %arg1, %arg0, %c0_i32 : i32, i32, i32
  }
  func.func @transform_5(%arg0: i32, %arg1: i32) -> (i32, i32, i32) {
    %c0_i32 = arith.constant 0 : i32
    %c0_i32_0 = arith.constant 0 : i32
    return %arg1, %arg0, %c0_i32 : i32, i32, i32
  }
}

</mosaic_0001>

<bundles_post_ra>
// kernel: tpu_custom_call.1
= control target key start
LH: loop header
LB: loop body
LE: loop exit
PB: predicated region body
PF: predicated region fallthrough
CT: control target
= control target key end

     0   :  { %s1663_s0 = inlined_call_operand.hbm [shape: f32[16,256], index: 0, kind: input, shape index: {}]   ;;  %s1664_s1 = inlined_call_operand.hbm [shape: f32[16,256], index: 1, kind: input, shape index: {}]   ;;  %s1665_s2 = inlined_call_operand.hbm [shape: f32[2,16,256], index: 2, kind: input, shape index: {}]   ;;  %s1666_s3 = inlined_call_operand.hbm [shape: f32[2,16,256], index: 3, kind: input, shape index: {}]   ;;  %s1667_s4 = inlined_call_operand.hbm [shape: f32[2,16,256], index: 4, kind: output, shape index: {0}]   ;;  %s1668_s5 = inlined_call_operand.hbm [shape: f32[2,16,256], index: 5, kind: output, shape index: {1}]  }
   0x1   :  { %1684 = sst [smem:[#allocation23_spill]] %s1663_s0 }
   0x2   :  { %1685 = sst [smem:[#allocation24_spill]] %s1665_s2 }
   0x3   :  { %1686 = sst [smem:[#allocation25_spill]] %s1668_s5 }
   0x4   :  { %11 = vsyncpa [#allocation3], 0 }
   0x5   :  { %12 = vsyncpa [#allocation6], 0 }
   0x6   :  { %13 = vsyncpa [#allocation4], 0 }
   0x7   :  { %15 = vsyncpa [#allocation4 + $0x1], 0 }
   0x8   :  { %16 = vsyncpa [#allocation11], 0 }
   0x9   :  { %18 = vsyncpa [#allocation11 + $0x1], 0  ;;  %s1132_s18 = smov 0   ;;  %s1134_s19 = smov 0  }
   0xa   :  { %s1136_s20 = smov 0   ;;  %s1138_s21 = smov 0  }
   0xb   :  { %s1140_s22 = smov 0   ;;  %s1142_s23 = smov 0  }
   0xc LB: > { %1687 = sst [smem:[#allocation17_spill]] %s1069_s18  ;;  %s1163_s24 = sadd.s32 4294967295, %s1089_s23   ;;  %s1089_s23 = sphi %s1142_s23, %s24_s23   ;;  %s1085_s22 = sphi %s1140_s22, %s1736_s22   ;;  %s1081_s21 = sphi %s1138_s21, %s1735_s21   ;;  %s1077_s20 = sphi %s1136_s20, %s1731_s20   ;;  %s1073_s19 = sphi %s1134_s19, %s1734_s19   ;;  %s1069_s18 = sphi %s1132_s18, %s1733_s18  }
   0xd   : > { %1688 = sst [smem:[#allocation18_spill]] %s1077_s20  ;;  %s723_s25 = sadd.s32 4294967294, %s1089_s23  }
   0xe   : > { %p104_p0 = scmp.ne.s32.totalorder %s1077_s20, %s1073_s19  ;;  %p105_p1 = scmp.eq.s32.totalorder %s1089_s23, 0 }
   0xf   : > { %p110_p2 = scmp.ne.s32.totalorder %s1073_s19, %s1069_s18  ;;  %p1669_p3 = scmp.eq.s32.totalorder %s1163_s24, 0 }
  0x10   : > { %p164_p4 = scmp.eq.s32.totalorder %s1163_s24, 1  ;;  %p1174_p5 = por %p105_p1, %p104_p0 }
  0x11   : > { %p170_p6 = scmp.eq.s32.totalorder %s723_s25, 1  ;;  %p1180_p7 = por %p1669_p3, %p110_p2 }
  0x12   : > { %p1184_p8 = por %p164_p4, %p104_p0  ;;  %p724_p10 = scmp.ge.s32.totalorder %s1089_s23, 1 }
  0x13   : > { %s1690_s28 = scalar_select %p1180_p7, 1, 0 }
  0x14   : > { %s1691_s29 = scalar_select %p1184_p8, 1, 0 }
  0x15   : > { %p1188_p9 = por %p170_p6, %p110_p2  ;;  %p205_p11 = scmp.lt.s32.totalorder %s1089_s23, 3 }
  0x16   : > { %1692 = sst [smem:[#allocation19_spill]] %s1691_s29  ;;  %s1091_s7 = smov [#allocation2]  }
  0x17   : > { %s1693_s30 = scalar_select %p1188_p9, 1, 0 }
  0x18   : > { %p1194_p12 = pnand %p724_p10, %p205_p11  ;;  %s221_s8 = sshll.u32 %s1091_s7, 4  ;;  %s1198_s8 = int_to_ptr.vmem [resolvable:$true] %s221_s8 }
  0x19   : > { %1694 = sst [smem:[#allocation20_spill]] %s1693_s30  ;;  %p792_p1 = scmp.lt.s32.totalorder %s1089_s23, 2 }
  0x1a   : > { %s1695_s6 = scalar_select %p1194_p12, 1, 0 }
  0x1b   : > { %p769_p13 = pneg %p1194_p12  ;;  %p1212_p4 = pnand %p792_p1, %p1174_p5 }
  0x1c   : > { %s33_s11 = sadd.s32 1, %s1085_s22  ;;  %s1699_s0 = sld [smem:[#allocation23_spill]] }
  0x1d   : > { %p1206_p2 = pnand %p769_p13, %p1669_p3  ;;  %p1217_p6 = scmp.ge.s32.totalorder %s33_s11, 2 }
  0x1e   : > { %s1697_s10 = scalar_select %p1212_p4, 1, 0 }
  0x1f   : > { %p1678_p11 = pneg %p1206_p2 }
  0x22   : > { %s851_s15 = scalar_lea.hbm %s1699_s0, 512 }
  0x23   : > { %p852_p10 = scmp.ne.s32.totalorder %s1699_s0, %s851_s15  ;;  %p858_p1 = scmp.lt.u32.totalorder %s851_s15, %s1699_s0 }
  0x25   : > { %p854_p5 = pnand %p1678_p11, %p852_p10 }
  0x27   : > { %p855_p13 = pneg %p854_p5 }
  0x29   : > { %p860_p0 = pnand %p858_p1, %p855_p13 }
  0x2b   : > { %863 = shalt.err (!%p860_p0)
}
  0x2c   : > { %s864_s7 = scalar_lea.vmem %s1198_s8, 512  ;;  %p872_p7 = scmp.lt.s32.totalorder %s1198_s8, %s1198_s8 }
  0x2d   : > { %p865_p3 = scmp.ne.s32.totalorder %s1198_s8, %s864_s7  ;;  %p873_p10 = scmp.lt.s32.totalorder %s864_s7, %s864_s7 }
  0x2f   : > { %p867_p9 = pnand %p865_p3, %p1678_p11  ;;  %p874_p5 = por %p873_p10, %p872_p7 }
  0x31   : > { %p868_p8 = pneg %p867_p9 }
  0x33   : > { %p875_p12 = pnand %p874_p5, %p868_p8 }
  0x35   : > { %878 = shalt.err (!%p875_p12)
}
  0x36   : > { %s1092_s13 = smov 256   ;;  %s1093_s14 = smov 16  }
  0x37   : > { %772 = dma.hbm_to_vmem [thread:$0]  (!%p1206_p2), %s1699_s0, 512, %s1198_s8, [#allocation3], %s1092_s13, %s1092_s13, %s1093_s14  }
  0x38   : > { %s252_s17 = sand.u32 1, %s1089_s23   ;;  %s1738_s11 = smov (%p1217_p6, %s33_s11), 0 }
  0x39   : > { %1700 = sst [smem:[#allocation21_spill]] %s1738_s11  ;;  %s254_s25 = sand.u32 1, %s1077_s20  }
  0x3a   : > { %s92_s27 = ssub.s32 %s1085_s22, %s1738_s11  ;;  %s1259_s7 = sshll.u32 %s254_s25, 5 }
  0x3b   : > { %p95_p3 = scmp.eq.s32.totalorder %s92_s27, 0  ;;  %s749_s26 = sshll.u32 %s1085_s22, 9 }
  0x3c   : > { %s256_s30 = scalar_lea.vmem [#allocation7], %s1259_s7  ;;  %s1701_s5 = sadd.s32 1, %s1077_s20 }
  0x3d   : > { %s266_s18 = sshll.u32 %s256_s30, 4  ;;  %s1703_s2 = sld [smem:[#allocation24_spill]]  ;;  %s1275_s18 = int_to_ptr.vmem [resolvable:$true] %s266_s18 }
  0x3e   : > { %s1266_s29 = scalar_select %p95_p3, %s1077_s20, %s1701_s5  }
  0x3f   : > { %s1277_s16 = scalar_lea.sflag [#allocation3], %s252_s17  ;;  %p1681_p8 = pneg %p1212_p4 }
  0x40   : > { %1702 = sst [smem:[#allocation22_spill]] %s1266_s29 }
  0x43   : > { %s1273_s12 = scalar_lea.hbm %s1703_s2, %s749_s26  ;;  %s884_s27 = scalar_lea.hbm %s1703_s2, 1024 }
  0x44   : > { %s879_s25 = scalar_lea.hbm %s1273_s12, 512  ;;  %p885_p0 = scmp.lt.u32.totalorder %s1273_s12, %s1703_s2 }
  0x45   : > { %p880_p7 = scmp.ne.s32.totalorder %s1273_s12, %s879_s25  ;;  %p886_p6 = scmp.lt.u32.totalorder %s884_s27, %s879_s25 }
  0x46   : > { %p888_p1 = scmp.lt.u32.totalorder %s879_s25, %s1273_s12 }
  0x47   : > { %p882_p9 = pnand %p1681_p8, %p880_p7  ;;  %p887_p13 = por %p886_p6, %p885_p0 }
  0x49   : > { %p883_p12 = pneg %p882_p9  ;;  %p889_p10 = por %p888_p1, %p887_p13 }
  0x4b   : > { %p890_p5 = pnand %p889_p10, %p883_p12 }
  0x4d   : > { %893 = shalt.err (!%p890_p5)
}
  0x4e   : > { %s894_s17 = scalar_lea.vmem %s1275_s18, 512  ;;  %s1094_s5 = smov [#allocation7]  }
  0x4f   : > { %p895_p3 = scmp.ne.s32.totalorder %s1275_s18, %s894_s17  ;;  %s899_s30 = sshll.u32 %s1094_s5, 4  ;;  %s900_s30 = int_to_ptr.vmem [resolvable:$false] %s899_s30 }
  0x50   : > { %s901_s8 = scalar_lea.vmem %s900_s30, 1024  ;;  %p902_p11 = scmp.lt.s32.totalorder %s1275_s18, %s900_s30 }
  0x51   : > { %p897_p7 = pnand %p895_p3, %p1681_p8  ;;  %p903_p0 = scmp.lt.s32.totalorder %s901_s8, %s894_s17 }
  0x53   : > { %p898_p9 = pneg %p897_p7  ;;  %p904_p6 = por %p903_p0, %p902_p11 }
  0x55   : > { %p905_p13 = pnand %p904_p6, %p898_p9 }
  0x57   : > { %908 = shalt.err (!%p905_p13)
}
  0x58   : > { %779 = dma.hbm_to_vmem [thread:$0]  (!%p1212_p4), %s1273_s12, 512, %s1275_s18, %s1277_s16, %s1092_s13, %s1092_s13, %s1093_s14  }
  0x59   : > { %s1095_s25 = smov [#allocation5]   ;;  %s1313_s5 = scalar_lea.hbm %s1666_s3, %s749_s26 }
  0x5a   : > { %s238_s27 = sshll.u32 %s1095_s25, 4  ;;  %s280_s30 = scalar_lea.vmem [#allocation8], %s1259_s7  ;;  %s239_s27 = int_to_ptr.vmem [resolvable:$true] %s238_s27 }
  0x5b   : > { %s290_s8 = sshll.u32 %s280_s30, 4  ;;  %s909_s11 = scalar_lea.hbm %s1664_s1, 512  ;;  %s1339_s8 = int_to_ptr.vmem [resolvable:$true] %s290_s8 }
  0x5c   : > { %p910_p11 = scmp.ne.s32.totalorder %s1664_s1, %s909_s11  ;;  %p1704_p12 = pneg %p1206_p2 }
  0x5d   : > { %p916_p5 = scmp.lt.u32.totalorder %s909_s11, %s1664_s1 }
  0x5e   : > { %p912_p1 = pnand %p910_p11, %p1704_p12 }
  0x60   : > { %p913_p10 = pneg %p912_p1 }
  0x62   : > { %p918_p3 = pnand %p916_p5, %p913_p10 }
  0x64   : > { %921 = shalt.err (!%p918_p3)
}
  0x65   : > { %s922_s26 = scalar_lea.vmem %s239_s27, 512  ;;  %p1705_p9 = pmov %p1704_p12 }
  0x66   : > { %p923_p7 = scmp.ne.s32.totalorder %s239_s27, %s922_s26  ;;  %p930_p13 = scmp.lt.s32.totalorder %s239_s27, %s239_s27 }
  0x67   : > { %p931_p8 = scmp.lt.s32.totalorder %s922_s26, %s922_s26 }
  0x68   : > { %p925_p0 = pnand %p923_p7, %p1705_p9 }
  0x69   : > { %p932_p4 = por %p931_p8, %p930_p13 }
  0x6a   : > { %p926_p6 = pneg %p925_p0 }
  0x6c   : > { %p933_p11 = pnand %p932_p4, %p926_p6 }
  0x6e   : > { %936 = shalt.err (!%p933_p11)
}
  0x6f   : > { %775 = dma.hbm_to_vmem [thread:$0]  (!%p1206_p2), %s1664_s1, 512, %s239_s27, [#allocation6], %s1092_s13, %s1092_s13, %s1093_s14  }
  0x70   : > { %s937_s20 = scalar_lea.hbm %s1313_s5, 512  ;;  %p1706_p4 = scmp.ne.s32.totalorder %s1697_s10, 0 }
  0x71   : > { %p938_p8 = scmp.ne.s32.totalorder %s1313_s5, %s937_s20  ;;  %s942_s11 = scalar_lea.hbm %s1666_s3, 1024 }
  0x72   : > { %p1707_p12 = pneg %p1706_p4  ;;  %p943_p5 = scmp.lt.u32.totalorder %s1313_s5, %s1666_s3 }
  0x73   : > { %p944_p3 = scmp.lt.u32.totalorder %s942_s11, %s937_s20  ;;  %p946_p9 = scmp.lt.u32.totalorder %s937_s20, %s1313_s5 }
  0x74   : > { %p940_p1 = pnand %p938_p8, %p1707_p12 }
  0x75   : > { %p945_p7 = por %p944_p3, %p943_p5 }
  0x76   : > { %p941_p10 = pneg %p940_p1 }
  0x77   : > { %p947_p2 = por %p946_p9, %p945_p7 }
  0x79   : > { %p948_p0 = pnand %p947_p2, %p941_p10 }
  0x7b   : > { %951 = shalt.err (!%p948_p0)
}
  0x7c   : > { %s952_s27 = scalar_lea.vmem %s1339_s8, 512  ;;  %p1708_p13 = pmov %p1707_p12 }
  0x7d   : > { %p953_p6 = scmp.ne.s32.totalorder %s1339_s8, %s952_s27  ;;  %s1096_s15 = smov [#allocation8]  }
  0x7e   : > { %s957_s17 = sshll.u32 %s1096_s15, 4  ;;  %s958_s17 = int_to_ptr.vmem [resolvable:$false] %s957_s17 }
  0x7f   : > { %p955_p11 = pnand %p953_p6, %p1708_p13  ;;  %s959_s30 = scalar_lea.vmem %s958_s17, 1024 }
  0x80   : > { %p960_p12 = scmp.lt.s32.totalorder %s1339_s8, %s958_s17  ;;  %p961_p1 = scmp.lt.s32.totalorder %s959_s30, %s952_s27 }
  0x81   : > { %p956_p8 = pneg %p955_p11 }
  0x82   : > { %p962_p5 = por %p961_p1, %p960_p12 }
  0x84   : > { %p963_p3 = pnand %p962_p5, %p956_p8 }
  0x86   : > { %966 = shalt.err (!%p963_p3)
}
  0x87   : > { %782 = dma.hbm_to_vmem [thread:$0]  (!%p1706_p4), %s1313_s5, 512, %s1339_s8, %s1277_s16, %s1092_s13, %s1092_s13, %s1093_s14  }
  0x88   : > { %p1709_p10 = scmp.ne.s32.totalorder %s1695_s6, 0 }
  0x89   : > { %p1710_p7 = scmp.eq.s32.totalorder (!%p1709_p10), %s1163_s24, 0 }
  0x8a   : > { %302 = sbr.rel (%p1709_p10) target bundleno = 334 (0x14e), region = 36 }
  0x91   : > { %1048 = dma.done.wait (%p1710_p7), [#allocation3], 512   ;;  %p1711_p9 = pmov %p1710_p7 }
  0x92   : > { %p1712_p2 = pmov %p1710_p7 }
  0x93   : > { %1050 = vsyncadd (%p1711_p9), [#allocation3], 4294966784 }
  0x94   : > { %1052 = dma.done.wait (%p1712_p2), [#allocation6], 512   ;;  %p1713_p0 = pmov %p1712_p2 }
  0x95   : > { %s312_s10 = sand.u32 1, %s1163_s24   ;;  %s1380_s13 = sand.u32 1, %s1073_s19  }
  0x96   : > { %1054 = vsyncadd (%p1713_p0), [#allocation6], 4294966784  ;;  %s1383_s6 = sshll.u32 %s1380_s13, 5  ;;  %s313_s14 = scalar_lea.sflag [#allocation3], %s312_s10 }
  0x97   : > { %s316_s16 = scalar_lea.vmem [#allocation7], %s1383_s6  ;;  %p1714_p4 = scmp.ne.s32.totalorder %s1690_s28, 0 }
  0x99   : > { %1056 = dma.done.wait (%p1714_p4), %s313_s14, 1024  }
  0x9a   : > { %1058 = vsyncadd (%p1714_p4), %s313_s14, 4294966272  ;;  %v1390_v0 = vld [vmem:[%s316_s16 + $0x8] sm:$0xff]  ;;  %v1392_v1 = vld [vmem:[%s316_s16] sm:$0xff]  ;;  %s1097_s5 = smov 112   ;;  %s1098_s24 = smov 16   ;;  %v376_v8 = vlaneseq }
  0x9b   : > { %415 = vrot.lane.b32.xlu1 %v1390_v0, %s1097_s5  ;;  %411 = vrot.lane.b32.xlu0 %v1392_v1, %s1097_s5  ;;  %v1396_v2 = vld [vmem:[%s316_s16 + $0x18] sm:$0xff]  ;;  %v1398_v3 = vld [vmem:[%s316_s16 + $0x10] sm:$0xff]  ;;  %s325_s28 = scalar_lea.vmem [#allocation8], %s1383_s6  ;;  %v1435_v16 = vld [vmem:[#allocation2 + $0x8] sm:$0xff]  ;;  %s751_s8 = sshll.u32 %s1081_s21, 9 }
  0x9c   : > { %v1411_v4 = vld [vmem:[%s325_s28 + $0x10] sm:$0xff]  ;;  %v1413_v5 = vld [vmem:[%s325_s28] sm:$0xff]  ;;  %v1417_v6 = vld [vmem:[%s325_s28 + $0x18] sm:$0xff]  ;;  %v1431_v11 = vand.u32 127, %v376_v8  ;;  %v442_v23 = vmul.f32 %v1390_v0, %v1435_v16  ;;  %s354_s18 = scalar_lea.vmem [#allocation9], %s1383_s6  ;;  %s1723_s2 = sld [smem:[#allocation19_spill]] }
  0x9d   : > { %v1419_v7 = vld [vmem:[%s325_s28 + $0x8] sm:$0xff]  ;;  %v1437_v18 = vld [vmem:[#allocation2] sm:$0xff]  ;;  %v1439_v19 = vld [vmem:[#allocation2 + $0x18] sm:$0xff]  ;;  %s535_s12 = sshll.u32 %s354_s18, 4  ;;  %s1512_s20 = scalar_lea.hbm %s1667_s4, %s751_s8  ;;  %s1514_s12 = int_to_ptr.vmem [resolvable:$true] %s535_s12 }
  0x9e   : > { %v378_v12 = vadd.s32 128, %v1431_v11  ;;  %v383_v15 = vand.u32 63, %v1431_v11  ;;  %v1441_v20 = vld [vmem:[#allocation2 + $0x10] sm:$0xff]  ;;  %vm419_vm0 = vcmp.lt.s32.totalorder %v1431_v11, 112  ;;  %vm432_vm2 = vcmp.lt.s32.totalorder %v1431_v11, 16  ;;  %v1471_v35 = vld [vmem:[#allocation5 + $0x18] sm:$0xff] }
  0x9f   : > { %417 = vrot.lane.b32.xlu1 %v1396_v2, %s1097_s5  ;;  %413 = vrot.lane.b32.xlu0 %v1398_v3, %s1097_s5  ;;  %v441_v25 = vmul.f32 %v1392_v1, %v1437_v18  ;;  %v444_v26 = vmul.f32 %v1396_v2, %v1439_v19  ;;  %v443_v27 = vmul.f32 %v1398_v3, %v1441_v20  ;;  %v1461_v29 = vld [vmem:[#allocation5 + $0x10] sm:$0xff]  ;;  %v1473_v37 = vld [vmem:[#allocation5] sm:$0xff]  ;;  %v1475_v38 = vld [vmem:[#allocation5 + $0x8] sm:$0xff]  ;;  %s514_s29 = scalar_lea.sflag [#allocation4], %s1380_s13  ;;  %s967_s9 = scalar_lea.vmem %s1514_s12, 512 }
  0xa0   : > { %v390_v17 = vand.u32 63, %v378_v12  ;;  %vm1446_vm1 = vcmp.lt.s32.totalorder %v383_v15, 16  ;;  %vm1499_vm4 = vcmp.lt.s32.totalorder %v383_v15, 32  ;;  %p968_p6 = scmp.ne.s32.totalorder %s1514_s12, %s967_s9  ;;  %s1099_s11 = smov [#allocation9]  }
  0xa1   : > { %s971_s7 = sshll.u32 %s1099_s11, 4  ;;  %s972_s7 = int_to_ptr.vmem [resolvable:$false] %s971_s7 }
  0xa2   : > { %vm1457_vm3 = vcmp.lt.s32.totalorder %v390_v17, 16  ;;  %vm1503_vm5 = vcmp.lt.s32.totalorder %v390_v17, 32  ;;  %p1724_p13 = scmp.ne.s32.totalorder %s1723_s2, 0  ;;  %s973_s25 = scalar_lea.vmem %s972_s7, 1024 }
  0xa3   : > { %426 = vrot.lane.b32.xlu1 %v1398_v3, %s1098_s24  ;;  %424 = vrot.lane.b32.xlu0 %v1392_v1, %s1098_s24  ;;  %p974_p12 = scmp.lt.s32.totalorder %s1514_s12, %s972_s7  ;;  %p975_p1 = scmp.lt.s32.totalorder %s973_s25, %s967_s9 }
  0xa4   : > { %p969_p11 = pnand %p968_p6, %p1724_p13 }
  0xa5   : > { %p976_p5 = por %p975_p1, %p974_p12 }
  0xa6   : > { %p970_p8 = pneg %p969_p11 }
  0xa7   : > { %430 = vrot.lane.b32.xlu1 %v1396_v2, %s1098_s24  ;;  %428 = vrot.lane.b32.xlu0 %v1390_v0, %s1098_s24 }
  0xa8   : > { %p977_p3 = pnand %p976_p5, %p970_p8 }
  0xab   : > { %467 = vrot.lane.b32.xlu1 %v1411_v4, %s1097_s5  ;;  %465 = vrot.lane.b32.xlu0 %v1413_v5, %s1097_s5 }
  0xaf   : > { %471 = vrot.lane.b32.xlu1 %v1417_v6, %s1097_s5  ;;  %469 = vrot.lane.b32.xlu0 %v1419_v7, %s1097_s5 }
  0xb3   : > { %479 = vrot.lane.b32.xlu1 %v1411_v4, %s1098_s24  ;;  %477 = vrot.lane.b32.xlu0 %v1413_v5, %s1098_s24 }
  0xb7   : > { %483 = vrot.lane.b32.xlu1 %v1417_v6, %s1098_s24  ;;  %481 = vrot.lane.b32.xlu0 %v1419_v7, %s1098_s24 }
 0x10d   : > { %v416_v9 = vpop.permute.xlu1 %415  ;;  %v412_v10 = vpop.permute.xlu0 %411 }
 0x10e   : > { %v420_v30 = vsel %vm419_vm0, %v412_v10, %v416_v9  ;;  %v422_v31 = vsel %vm419_vm0, %v416_v9, %v412_v10 }
 0x111   : > { %v418_v13 = vpop.permute.xlu1 %417  ;;  %v414_v14 = vpop.permute.xlu0 %413 }
 0x112   : > { %v421_v32 = vsel %vm419_vm0, %v414_v14, %v418_v13  ;;  %v423_v33 = vsel %vm419_vm0, %v418_v13, %v414_v14 }
 0x115   : > { %v427_v21 = vpop.permute.xlu1 %426  ;;  %v425_v22 = vpop.permute.xlu0 %424 }
 0x119   : > { %v431_v34 = vpop.permute.xlu1 %430  ;;  %v429_v36 = vpop.permute.xlu0 %428 }
 0x11a   : > { %v434_v39 = vsel %vm432_vm2, %v427_v21, %v431_v34  ;;  %v436_v40 = vsel %vm432_vm2, %v431_v34, %v427_v21  ;;  %v433_v41 = vsel %vm432_vm2, %v425_v22, %v429_v36  ;;  %v435_v42 = vsel %vm432_vm2, %v429_v36, %v425_v22 }
 0x11b   : > { %v439_v43 = vsel %vm1446_vm1, %v421_v32, %v436_v40  ;;  %v440_v44 = vsel %vm1457_vm3, %v423_v33, %v434_v39  ;;  %v437_v45 = vsel %vm1446_vm1, %v420_v30, %v435_v42  ;;  %v438_v46 = vsel %vm1457_vm3, %v422_v31, %v433_v41 }
 0x11c   : > { %v447_v47 = vmul.f32 %v439_v43, %v1461_v29  ;;  %v448_v48 = vmul.f32 %v440_v44, %v1471_v35  ;;  %v445_v49 = vmul.f32 %v437_v45, %v1473_v37  ;;  %v446_v50 = vmul.f32 %v438_v46, %v1475_v38 }
 0x11d   : > { %v468_v53 = vpop.permute.xlu1 %467  ;;  %v466_v54 = vpop.permute.xlu0 %465 }
 0x11e   : > { %v451_v55 = vadd.f32 %v447_v47, %v443_v27  ;;  %v452_v56 = vadd.f32 %v448_v48, %v444_v26  ;;  %v449_v57 = vadd.f32 %v445_v49, %v441_v25  ;;  %v450_v58 = vadd.f32 %v446_v50, %v442_v23 }
 0x120   : > { %v455_v59 = vsel %vm1499_vm4, %v451_v55, %v1398_v3  ;;  %v456_v60 = vsel %vm1503_vm5, %v452_v56, %v1396_v2  ;;  %v453_v61 = vsel %vm1499_vm4, %v449_v57, %v1392_v1  ;;  %v454_v62 = vsel %vm1503_vm5, %v450_v58, %v1390_v0 }
 0x121   : > { %459 = vst [vmem:[%s354_s18 + $0x10] sm:$0xff] %v455_v59  ;;  %460 = vst [vmem:[%s354_s18 + $0x18] sm:$0xff] %v456_v60  ;;  %v472_v63 = vpop.permute.xlu1 %471  ;;  %v470_v8 = vpop.permute.xlu0 %469 }
 0x122   : > { %457 = vst [vmem:[%s354_s18] sm:$0xff] %v453_v61  ;;  %458 = vst [vmem:[%s354_s18 + $0x8] sm:$0xff] %v454_v62 }
 0x123   : > { %980 = shalt.err (!%p977_p3)
}
 0x124   : > { %s981_s27 = scalar_lea.hbm %s1512_s20, 512  ;;  %s985_s30 = scalar_lea.hbm %s1667_s4, 1024 }
 0x125   : > { %p982_p10 = scmp.ne.s32.totalorder %s1512_s20, %s981_s27  ;;  %p986_p2 = scmp.lt.u32.totalorder %s1512_s20, %s1667_s4 }
 0x126   : > { %p987_p0 = scmp.lt.u32.totalorder %s985_s30, %s981_s27  ;;  %p989_p6 = scmp.lt.u32.totalorder %s981_s27, %s1512_s20 }
 0x127   : > { %p983_p7 = pnand %p982_p10, %p1724_p13 }
 0x128   : > { %p988_p4 = por %p987_p0, %p986_p2 }
 0x129   : > { %p984_p9 = pneg %p983_p7 }
 0x12a   : > { %p990_p11 = por %p989_p6, %p988_p4 }
 0x12c   : > { %p991_p8 = pnand %p990_p11, %p984_p9 }
 0x12e   : > { %994 = shalt.err (!%p991_p8)
}
 0x12f   : > { %s1100_s16 = smov 256   ;;  %v480_v0 = vpop.permute.xlu1 %479  ;;  %v478_v1 = vpop.permute.xlu0 %477  ;;  %v495_v2 = vmul.f32 %v1411_v4, %v1441_v20  ;;  %v493_v3 = vmul.f32 %v1413_v5, %v1437_v18  ;;  %v496_v9 = vmul.f32 %v1417_v6, %v1439_v19  ;;  %v494_v10 = vmul.f32 %v1419_v7, %v1435_v16  ;;  %s361_s5 = scalar_lea.vmem [#allocation10], %s1383_s6 }
 0x130   : > { %765 = dma.vmem_to_hbm [thread:$0]  (%p1724_p13), %s1514_s12, 512, %s1512_s20, %s514_s29, %s1100_s16, %s1100_s16, %s1098_s24   ;;  %v474_v12 = vsel %vm419_vm0, %v468_v53, %v472_v63  ;;  %v476_v13 = vsel %vm419_vm0, %v472_v63, %v468_v53  ;;  %v473_v14 = vsel %vm419_vm0, %v466_v54, %v470_v8  ;;  %v475_v15 = vsel %vm419_vm0, %v470_v8, %v466_v54 }
 0x131   : > { %s554_s28 = sshll.u32 %s361_s5, 4  ;;  %s1725_s26 = sld [smem:[#allocation25_spill]]  ;;  %s1599_s28 = int_to_ptr.vmem [resolvable:$true] %s554_s28 }
 0x132   : > { %s519_s21 = scalar_lea.sflag [#allocation11], %s1380_s13  ;;  %s995_s6 = scalar_lea.vmem %s1599_s28, 512 }
 0x133   : > { %v484_v17 = vpop.permute.xlu1 %483  ;;  %v482_v18 = vpop.permute.xlu0 %481  ;;  %p996_p12 = scmp.ne.s32.totalorder %s1599_s28, %s995_s6 }
 0x134   : > { %v486_v19 = vsel %vm432_vm2, %v480_v0, %v484_v17  ;;  %v488_v16 = vsel %vm432_vm2, %v484_v17, %v480_v0  ;;  %v485_v20 = vsel %vm432_vm2, %v478_v1, %v482_v18  ;;  %v487_v21 = vsel %vm432_vm2, %v482_v18, %v478_v1 }
 0x135   : > { %v491_v22 = vsel %vm1446_vm1, %v474_v12, %v488_v16  ;;  %v492_v23 = vsel %vm1457_vm3, %v476_v13, %v486_v19  ;;  %v489_v25 = vsel %vm1446_vm1, %v473_v14, %v487_v21  ;;  %v490_v26 = vsel %vm1457_vm3, %v475_v15, %v485_v20  ;;  %p997_p1 = pnand %p996_p12, %p1724_p13 }
 0x136   : > { %v499_v27 = vmul.f32 %v491_v22, %v1461_v29  ;;  %v500_v30 = vmul.f32 %v492_v23, %v1471_v35  ;;  %v497_v11 = vmul.f32 %v489_v25, %v1473_v37  ;;  %v498_v31 = vmul.f32 %v490_v26, %v1475_v38 }
 0x137   : > { %s1597_s0 = scalar_lea.hbm %s1725_s26, %s751_s8  ;;  %p998_p5 = pneg %p997_p1 }
 0x138   : > { %v503_v32 = vadd.f32 %v499_v27, %v495_v2  ;;  %v504_v33 = vadd.f32 %v500_v30, %v496_v9  ;;  %v501_v34 = vadd.f32 %v497_v11, %v493_v3  ;;  %v502_v24 = vadd.f32 %v498_v31, %v494_v10  ;;  %s1101_s8 = smov [#allocation10]  }
 0x139   : > { %s999_s20 = sshll.u32 %s1101_s8, 4  ;;  %s1000_s20 = int_to_ptr.vmem [resolvable:$false] %s999_s20 }
 0x13a   : > { %v507_v28 = vsel %vm1499_vm4, %v503_v32, %v1411_v4  ;;  %v508_v29 = vsel %vm1503_vm5, %v504_v33, %v1417_v6  ;;  %v505_v35 = vsel %vm1499_vm4, %v501_v34, %v1413_v5  ;;  %v506_v36 = vsel %vm1503_vm5, %v502_v24, %v1419_v7  ;;  %s1001_s29 = scalar_lea.vmem %s1000_s20, 1024  ;;  %p1002_p3 = scmp.lt.s32.totalorder %s1599_s28, %s1000_s20 }
 0x13b   : > { %511 = vst [vmem:[%s361_s5 + $0x10] sm:$0xff] %v507_v28  ;;  %512 = vst [vmem:[%s361_s5 + $0x18] sm:$0xff] %v508_v29  ;;  %p1003_p10 = scmp.lt.s32.totalorder %s1001_s29, %s995_s6 }
 0x13c   : > { %509 = vst [vmem:[%s361_s5] sm:$0xff] %v505_v35  ;;  %510 = vst [vmem:[%s361_s5 + $0x8] sm:$0xff] %v506_v36 }
 0x13d   : > { %p1004_p7 = por %p1003_p10, %p1002_p3 }
 0x13f   : > { %p1005_p9 = pnand %p1004_p7, %p998_p5 }
 0x141   : > { %1008 = shalt.err (!%p1005_p9)
}
 0x142   : > { %s1009_s9 = scalar_lea.hbm %s1597_s0, 512  ;;  %s1013_s25 = scalar_lea.hbm %s1725_s26, 1024 }
 0x143   : > { %p1010_p2 = scmp.ne.s32.totalorder %s1597_s0, %s1009_s9  ;;  %p1014_p6 = scmp.lt.u32.totalorder %s1597_s0, %s1725_s26 }
 0x144   : > { %p1015_p11 = scmp.lt.u32.totalorder %s1013_s25, %s1009_s9  ;;  %p1017_p12 = scmp.lt.u32.totalorder %s1009_s9, %s1597_s0 }
 0x145   : > { %p1011_p0 = pnand %p1010_p2, %p1724_p13 }
 0x146   : > { %p1016_p8 = por %p1015_p11, %p1014_p6 }
 0x147   : > { %p1012_p4 = pneg %p1011_p0 }
 0x148   : > { %p1018_p1 = por %p1017_p12, %p1016_p8 }
 0x14a   : > { %p1019_p5 = pnand %p1018_p1, %p1012_p4 }
 0x14c   : > { %1022 = shalt.err (!%p1019_p5)
}
 0x14d   : > { %766 = dma.vmem_to_hbm [thread:$0]  (%p1724_p13), %s1599_s28, 512, %s1597_s0, %s519_s21, %s1100_s16, %s1100_s16, %s1098_s24  }
 0x14e PF: > { %s1726_s17 = sld [smem:[#allocation17_spill]]  ;;  %s1727_s30 = sld [smem:[#allocation20_spill]] }
 0x14f   : > { %p1729_p10 = scmp.ge.s32.totalorder %s1089_s23, 2 }
 0x154   : > { %s569_s10 = sand.u32 1, %s1726_s17   ;;  %p1728_p3 = scmp.ne.s32.totalorder %s1727_s30, 0 }
 0x155   : > { %s570_s14 = scalar_lea.sflag [#allocation4], %s569_s10 }
 0x156   : > { %p784_p7 = pnand %p1729_p10, %p1728_p3 }
 0x158   : > { %1060 = dma.done.wait (!%p784_p7), %s570_s14, 512  }
 0x159   : > { %1062 = vsyncadd (!%p784_p7), %s570_s14, 4294966784  ;;  %s579_s2 = scalar_lea.sflag [#allocation11], %s569_s10 }
 0x15a   : > { %1064 = dma.done.wait (!%p784_p7), %s579_s2, 512  }
 0x15b   : > { %1066 = vsyncadd (!%p784_p7), %s579_s2, 4294966784  ;;  %s24_s23 = sadd.s32 1, %s1089_s23   ;;  %s1730_s13 = sld [smem:[#allocation18_spill]] }
 0x15c   : > { %p21_p9 = scmp.ge.s32.totalorder %s24_s23, 4   ;;  %s1731_s20 = sld [smem:[#allocation22_spill]] }
 0x15d   : > { %s1732_s24 = sld [smem:[#allocation21_spill]]  ;;  %s1733_s18 = smov %s1073_s19 }
 0x15e   : > { %s1735_s21 = smov %s1085_s22  ;;  %23 = sbr.rel (!%p21_p9) target bundleno = 12 (0xc), region = 118 }
 0x161   : > { %s1734_s19 = smov %s1730_s13 }
 0x163   : > { %s1736_s22 = smov %s1732_s24 }
 0x165   :  { %584 = vsyncpa [#allocation3], 1 }
 0x166   :  { %586 = vsyncpa [#allocation3 + $0x1], 1 }
 0x167   :  { %587 = vsyncpa [#allocation6], 1 }
 0x168   :  { %588 = vsyncpa [#allocation4], 1 }
 0x169   :  { %590 = vsyncpa [#allocation4 + $0x1], 1 }
 0x16a   :  { %591 = vsyncpa [#allocation11], 1 }
 0x16b   :  { %593 = vsyncpa [#allocation11 + $0x1], 1 }

</bundles_post_ra>
